<compile_context>
chip_gen: v5e
topology: v5e:2x2
jax: 0.10.0
libtpu: 0.0.40
codegen_flags: <defaults>
</compile_context>

<pallas_src>
import jax
import jax.numpy as jnp
from jax.experimental import pallas as pl
from jax.experimental.pallas import tpu as pltpu

THRESH_Z = 800.0              # vertical conflict threshold (same constant as forward())
METERS_PER_NM = 1852.0        # the "/ 1852" in forward()
INV_METERS_PER_NM = 1.0 / METERS_PER_NM
Z_SENTINEL = 1.0e9            # padded timesteps: |dz| >> 800 -> masked to +inf

_ROW_BLOCK = 8                # sublane sub-block so the elementwise chain stays in vregs


def _min_dist_kernel(diff_ref, dev_ref, o_ref, min_sc):
    """diff_ref: (3, ts, tt) VMEM block of (base_deviated - base_other).
       dev_ref : (3, N)      SMEM table of per-value-to-test (dx, dy, dz) offsets.
       o_ref   : (ts, N)     min xy distance in NM over timesteps with |dz| < 800.
       min_sc  : (ts, N)     VMEM running min of squared xy distance (meters^2)."""
    k = pl.program_id(1)

    @pl.when(k == 0)
    def _init():
        min_sc[...] = jnp.full(min_sc.shape, jnp.inf, dtype=min_sc.dtype)

    ts, n_vals = min_sc.shape

    # Small static loops: row blocks of 8 sublanes x full tt lanes, per value n.
    # Each temporary is a handful of vregs -> no full-tile vst/vld round trips.
    for r in range(0, ts, _ROW_BLOCK):
        bx = diff_ref[0, r:r + _ROW_BLOCK, :]          # [8, tt]
        by = diff_ref[1, r:r + _ROW_BLOCK, :]
        bz = diff_ref[2, r:r + _ROW_BLOCK, :]
        for n in range(n_vals):
            dev_x = dev_ref[0, n]                      # SMEM scalars (free broadcast)
            dev_y = dev_ref[1, n]
            dev_z = dev_ref[2, n]
            dx = bx + dev_x
            dy = by + dev_y
            dz = bz + dev_z
            d2 = dx * dx + dy * dy                     # squared xy distance
            masked = jnp.where(jnp.abs(dz) < THRESH_Z, d2, jnp.inf)
            col = jnp.min(masked, axis=-1, keepdims=True)          # [8, 1]
            min_sc[r:r + _ROW_BLOCK, n:n + 1] = jnp.minimum(
                min_sc[r:r + _ROW_BLOCK, n:n + 1], col)

    @pl.when(k == pl.num_programs(1) - 1)
    def _finalize():
        # sqrt after the min (exact: min is monotone, d2 >= 0); mul, not divide.
        o_ref[...] = jnp.sqrt(min_sc[...]) * INV_METERS_PER_NM


def _round_up(x, m):
    return ((x + m - 1) // m) * m


def _choose_tiles(S, T):
    """Pick (ts, tt, S_pad, T_pad): ts multiple of 8, tt multiple of 128 (<=512),
    >=2 parallel grid steps when S allows (v7x megacore), VMEM-safe on v5e/v6e/v7x."""
    T128 = _round_up(T, 128)
    tt = min(512, T128)
    T_pad = _round_up(T128, tt)

    S8 = _round_up(S, 8)
    ts = min(S8, 128)                     # 3*128*512*4B = 768 KiB/block (x2 buffered)
    if S8 < 2 * ts and S8 >= 16:
        # keep at least 2 steps on the parallel axis when the problem allows it
        ts = max(8, (S8 // 2) // 8 * 8)
    S_pad = _round_up(S8, ts)
    return ts, tt, S_pad, T_pad


def min_distance_xy_on_conflicting_z(diff, dev):
    """diff: [3, S, T] f32 (deviated - other, per situation, per channel)
       dev : [3, N]    f32 (constant per-value-to-test offsets: dx, dy, dz)
       returns [S, N] min xy distance in NM over timesteps with |dz| < 800."""
    C, S, T = diff.shape
    C2, N = dev.shape
    assert C == 3 and C2 == 3
    diff = diff.astype(jnp.float32)
    dev = dev.astype(jnp.float32)

    ts, tt, S_pad, T_pad = _choose_tiles(S, T)

    # Pad T (lane axis) with a large sentinel so padded timesteps fail |dz|<800.
    if T_pad != T:
        diff = jnp.pad(diff, ((0, 0), (0, 0), (0, T_pad - T)),
                       constant_values=Z_SENTINEL)
    # Pad S up to a multiple of ts; padded rows are sliced off afterwards.
    if S_pad != S:
        diff = jnp.pad(diff, ((0, 0), (0, S_pad - S), (0, 0)))

    grid = (S_pad // ts, T_pad // tt)

    out = pl.pallas_call(
        _min_dist_kernel,
        out_shape=jax.ShapeDtypeStruct((S_pad, N), jnp.float32),
        grid_spec=pltpu.PrefetchScalarGridSpec(
            num_scalar_prefetch=0,
            grid=grid,
            in_specs=[
                # diff is read exactly once in total across the grid.
                pl.BlockSpec((3, ts, tt), lambda i, k: (0, i, k)),
                # tiny offset table, whole array resident in SMEM as scalars.
                pl.BlockSpec(memory_space=pltpu.MemorySpace.SMEM),
            ],
            out_specs=pl.BlockSpec((ts, N), lambda i, k: (i, 0)),
            scratch_shapes=[pltpu.VMEM((ts, N), jnp.float32)],
        ),
        compiler_params=pltpu.CompilerParams(
            dimension_semantics=("parallel", "arbitrary"),
            vmem_limit_bytes=32 * 1024 * 1024,
        ),
    )(diff, dev)
    return out[:S]


class GenerateDistancePallas:
    """JAX/Pallas analogue of GenerateDistance.

    `ladd` is a list of per-situation dicts:
      {'base_deviated': [3, T], 'base_other': [3, T], 'fid': int, 'tzero': float}
    """

    def __init__(self, ladd):
        self.ladd = ladd

    def forward(self, dargs):
        # Same structural checks as the torch module's forward().
        for x in dargs.values():
            assert x.ndim <= 2
            assert x.ndim == 1 or x.shape[-1] <= 2

        # TODO(synk): Add_uncertainty / torchtraj trajectory-perturbation code is
        # not provided; `dargs` values are applied as constant per-channel offsets
        # to the deviated trajectory (synthetic stand-in).
        dxy = dargs["dxy"]                                        # [N, 2]
        dz = dargs["dz"]                                          # [N]
        dev = jnp.stack([dxy[:, 0], dxy[:, 1], dz], axis=0)       # [3, N]

        # diff = base_deviated - base_other, packed as [3, S, T]: the kernel reads
        # this compact array once instead of two full [3, S*N, T] broadcasts.
        base_a = jnp.stack([a["base_deviated"] for a in self.ladd], axis=1)  # [3, S, T]
        base_b = jnp.stack([a["base_other"] for a in self.ladd], axis=1)     # [3, S, T]
        diff = (base_a - base_b).astype(jnp.float32)

        min_xy = min_distance_xy_on_conflicting_z(diff, dev.astype(jnp.float32))  # [S, N]

        fid = jnp.asarray([a["fid"] for a in self.ladd], dtype=jnp.int32)         # [S]
        tzero = jnp.asarray([a["tzero"] for a in self.ladd], dtype=jnp.float32)   # [S]
        return min_xy, fid, tzero


def _reference(base_a, base_b, dev):
    """Pure-JAX reference replicating the original full-broadcast formulation.
    base_a, base_b: [S, 3, T]; dev: [3, N] -> [S, N]."""
    traj_a = base_a[:, :, None, :] + dev[None, :, :, None]        # [S, 3, N, T]
    traj_b = jnp.broadcast_to(base_b[:, :, None, :], traj_a.shape)
    dx = traj_a[:, 0] - traj_b[:, 0]
    dy = traj_a[:, 1] - traj_b[:, 1]
    dz = traj_a[:, 2] - traj_b[:, 2]
    dxy = jnp.sqrt(dx * dx + dy * dy)
    masked = jnp.where(jnp.abs(dz) < THRESH_Z, dxy, jnp.inf)
    return jnp.min(masked, axis=-1) / METERS_PER_NM               # [S, N]


def _make_bases(key, S, T):
    t = jnp.arange(T, dtype=jnp.float32)
    k1, k2, k3, k4 = jax.random.split(key, 4)
    start_a = jax.random.normal(k1, (S, 3)) * jnp.array([5000.0, 5000.0, 300.0])
    vel_a = jax.random.normal(k2, (S, 3)) * jnp.array([100.0, 100.0, 2.0])
    start_b = jax.random.normal(k3, (S, 3)) * jnp.array([5000.0, 5000.0, 300.0])
    vel_b = jax.random.normal(k4, (S, 3)) * jnp.array([100.0, 100.0, 2.0])
    base_a = start_a[:, :, None] + vel_a[:, :, None] * t   # [S, 3, T]
    base_b = start_b[:, :, None] + vel_b[:, :, None] * t   # [S, 3, T]
    return base_a, base_b


if __name__ == "__main__":
    key = jax.random.PRNGKey(0)
    kb, k5, k6, kb2 = jax.random.split(key, 4)

    # --- main module test ---------------------------------------------------
    S, N, T = 4, 8, 128
    base_a, base_b = _make_bases(kb, S, T)

    ladd = [
        {
            "base_deviated": base_a[s],
            "base_other": base_b[s],
            "fid": 1000 + s,
            "tzero": 60.0 * s,
        }
        for s in range(S)
    ]

    # dargs: dict of tensors with dim<=2 and last dim <=2 (values to test).
    dargs = {
        "dxy": jax.random.normal(k5, (N, 2)) * 500.0,  # [N, 2]
        "dz": jax.random.normal(k6, (N,)) * 200.0,     # [N]
    }

    model = GenerateDistancePallas(ladd)
    min_xy, fid, tzero = model.forward(dargs)
    jax.block_until_ready((min_xy, fid, tzero))

    dev = jnp.stack([dargs["dxy"][:, 0], dargs["dxy"][:, 1], dargs["dz"]], axis=0)
    ref = _reference(base_a, base_b, dev)

    assert min_xy.shape == (S, N) and fid.shape == (S,) and tzero.shape == (S,)
    assert bool(jnp.allclose(min_xy, ref, rtol=1e-5, atol=1e-5))

    # --- padding path test (S not multiple of 8, T not multiple of 128) ------
    S2, T2 = 5, 200
    base_a2, base_b2 = _make_bases(kb2, S2, T2)
    diff2 = jnp.transpose(base_a2 - base_b2, (1, 0, 2))           # [3, S2, T2]
    out2 = min_distance_xy_on_conflicting_z(diff2, dev)
    jax.block_until_ready(out2)
    ref2 = _reference(base_a2, base_b2, dev)
    assert out2.shape == (S2, N)
    assert bool(jnp.allclose(out2, ref2, rtol=1e-5, atol=1e-5))

    print("KERNEL_OK")
</pallas_src>

<mosaic_0001>
module attributes {stable_mosaic.version = 11 : i64} {
  func.func @_min_dist_kernel(%arg0: i32, %arg1: i32, %arg2: memref<3x8x128xf32, #tpu.memory_space<vmem>>, %arg3: memref<3x8xf32, #tpu.memory_space<smem>>, %arg4: memref<8x8xf32, #tpu.memory_space<vmem>>, %arg5: memref<8x8xf32, #tpu.memory_space<vmem>>) attributes {dimension_semantics = [#tpu.dimension_semantics<parallel>, #tpu.dimension_semantics<arbitrary>], iteration_bounds = array<i64: 1, 1>, scalar_prefetch = 0 : i64, scratch_operands = 1 : i64, tpu.core_type = #tpu.core_type<tc>, window_params = [{transform_indices = @transform_0, window_bounds = array<i64: 3, 8, 128>}, {transform_indices = @transform_1, window_bounds = array<i64: 3, 8>}, {transform_indices = @transform_2, window_bounds = array<i64: 8, 8>}]} {
    %c0_i32 = arith.constant 0 : i32
    %0 = arith.cmpi eq, %arg1, %c0_i32 : i32
    %1 = arith.extui %0 : i1 to i32
    %c0_i32_0 = arith.constant 0 : i32
    %2 = arith.cmpi ne, %1, %c0_i32_0 : i32
    scf.if %2 {
      %cst_107 = arith.constant 0x7F800000 : f32
      %188 = vector.broadcast %cst_107 : f32 to vector<8x8xf32>
      %c0_108 = arith.constant 0 : index
      %c0_109 = arith.constant 0 : index
      %189 = vector.load %arg5[%c0_108, %c0_109] : memref<8x8xf32, #tpu.memory_space<vmem>>, vector<8x8xf32>
      tpu.vector_store %arg5[%c0_108, %c0_109], %188 {strides = array<i32>} : memref<8x8xf32, #tpu.memory_space<vmem>>, vector<8x8xf32>,
    } else {
    }
    %c0 = arith.constant 0 : index
    %c0_1 = arith.constant 0 : index
    %c0_2 = arith.constant 0 : index
    %3 = vector.load %arg2[%c0, %c0_1, %c0_2] : memref<3x8x128xf32, #tpu.memory_space<vmem>>, vector<1x8x128xf32>
    %4 = vector.shape_cast %3 : vector<1x8x128xf32> to vector<8x128xf32>
    %c1 = arith.constant 1 : index
    %c0_3 = arith.constant 0 : index
    %c0_4 = arith.constant 0 : index
    %5 = vector.load %arg2[%c1, %c0_3, %c0_4] : memref<3x8x128xf32, #tpu.memory_space<vmem>>, vector<1x8x128xf32>
    %6 = vector.shape_cast %5 : vector<1x8x128xf32> to vector<8x128xf32>
    %c2 = arith.constant 2 : index
    %c0_5 = arith.constant 0 : index
    %c0_6 = arith.constant 0 : index
    %7 = vector.load %arg2[%c2, %c0_5, %c0_6] : memref<3x8x128xf32, #tpu.memory_space<vmem>>, vector<1x8x128xf32>
    %8 = vector.shape_cast %7 : vector<1x8x128xf32> to vector<8x128xf32>
    %c0_7 = arith.constant 0 : index
    %c0_8 = arith.constant 0 : index
    %9 = memref.load %arg3[%c0_7, %c0_8] : memref<3x8xf32, #tpu.memory_space<smem>>
    %c1_9 = arith.constant 1 : index
    %c0_10 = arith.constant 0 : index
    %10 = memref.load %arg3[%c1_9, %c0_10] : memref<3x8xf32, #tpu.memory_space<smem>>
    %c2_11 = arith.constant 2 : index
    %c0_12 = arith.constant 0 : index
    %11 = memref.load %arg3[%c2_11, %c0_12] : memref<3x8xf32, #tpu.memory_space<smem>>
    %12 = vector.broadcast %9 : f32 to vector<8x128xf32>
    %13 = arith.addf %4, %12 : vector<8x128xf32>
    %14 = vector.broadcast %10 : f32 to vector<8x128xf32>
    %15 = arith.addf %6, %14 : vector<8x128xf32>
    %16 = vector.broadcast %11 : f32 to vector<8x128xf32>
    %17 = arith.addf %8, %16 : vector<8x128xf32>
    %18 = arith.mulf %13, %13 : vector<8x128xf32>
    %19 = arith.mulf %15, %15 : vector<8x128xf32>
    %20 = arith.addf %18, %19 : vector<8x128xf32>
    %21 = math.absf %17 : vector<8x128xf32>
    %cst = arith.constant 8.000000e+02 : f32
    %22 = vector.broadcast %cst : f32 to vector<8x128xf32>
    %23 = arith.cmpf olt, %21, %22 : vector<8x128xf32>
    %cst_13 = arith.constant 0x7F800000 : f32
    %24 = vector.broadcast %cst_13 : f32 to vector<8x128xf32>
    %25 = arith.select %23, %20, %24 : vector<8x128xi1>, vector<8x128xf32>
    %cst_14 = arith.constant dense<0x7F800000> : vector<8xf32>
    %26 = vector.multi_reduction <minimumf>, %25, %cst_14 [1] : vector<8x128xf32> to vector<8xf32>
    %27 = vector.shape_cast %26 : vector<8xf32> to vector<8x1xf32>
    %c0_15 = arith.constant 0 : index
    %c0_16 = arith.constant 0 : index
    %28 = vector.load %arg5[%c0_15, %c0_16] : memref<8x8xf32, #tpu.memory_space<vmem>>, vector<8x1xf32>
    %29 = arith.minimumf %28, %27 : vector<8x1xf32>
    %c0_17 = arith.constant 0 : index
    %c0_18 = arith.constant 0 : index
    %30 = vector.load %arg5[%c0_17, %c0_18] : memref<8x8xf32, #tpu.memory_space<vmem>>, vector<8x1xf32>
    tpu.vector_store %arg5[%c0_17, %c0_18], %29 {strides = array<i32>} : memref<8x8xf32, #tpu.memory_space<vmem>>, vector<8x1xf32>,
    %c0_19 = arith.constant 0 : index
    %c1_20 = arith.constant 1 : index
    %31 = memref.load %arg3[%c0_19, %c1_20] : memref<3x8xf32, #tpu.memory_space<smem>>
    %c1_21 = arith.constant 1 : index
    %c1_22 = arith.constant 1 : index
    %32 = memref.load %arg3[%c1_21, %c1_22] : memref<3x8xf32, #tpu.memory_space<smem>>
    %c2_23 = arith.constant 2 : index
    %c1_24 = arith.constant 1 : index
    %33 = memref.load %arg3[%c2_23, %c1_24] : memref<3x8xf32, #tpu.memory_space<smem>>
    %34 = vector.broadcast %31 : f32 to vector<8x128xf32>
    %35 = arith.addf %4, %34 : vector<8x128xf32>
    %36 = vector.broadcast %32 : f32 to vector<8x128xf32>
    %37 = arith.addf %6, %36 : vector<8x128xf32>
    %38 = vector.broadcast %33 : f32 to vector<8x128xf32>
    %39 = arith.addf %8, %38 : vector<8x128xf32>
    %40 = arith.mulf %35, %35 : vector<8x128xf32>
    %41 = arith.mulf %37, %37 : vector<8x128xf32>
    %42 = arith.addf %40, %41 : vector<8x128xf32>
    %43 = math.absf %39 : vector<8x128xf32>
    %cst_25 = arith.constant 8.000000e+02 : f32
    %44 = vector.broadcast %cst_25 : f32 to vector<8x128xf32>
    %45 = arith.cmpf olt, %43, %44 : vector<8x128xf32>
    %cst_26 = arith.constant 0x7F800000 : f32
    %46 = vector.broadcast %cst_26 : f32 to vector<8x128xf32>
    %47 = arith.select %45, %42, %46 : vector<8x128xi1>, vector<8x128xf32>
    %cst_27 = arith.constant dense<0x7F800000> : vector<8xf32>
    %48 = vector.multi_reduction <minimumf>, %47, %cst_27 [1] : vector<8x128xf32> to vector<8xf32>
    %49 = vector.shape_cast %48 : vector<8xf32> to vector<8x1xf32>
    %c0_28 = arith.constant 0 : index
    %c1_29 = arith.constant 1 : index
    %50 = vector.load %arg5[%c0_28, %c1_29] : memref<8x8xf32, #tpu.memory_space<vmem>>, vector<8x1xf32>
    %51 = arith.minimumf %50, %49 : vector<8x1xf32>
    %c0_30 = arith.constant 0 : index
    %c1_31 = arith.constant 1 : index
    %52 = vector.load %arg5[%c0_30, %c1_31] : memref<8x8xf32, #tpu.memory_space<vmem>>, vector<8x1xf32>
    tpu.vector_store %arg5[%c0_30, %c1_31], %51 {strides = array<i32>} : memref<8x8xf32, #tpu.memory_space<vmem>>, vector<8x1xf32>,
    %c0_32 = arith.constant 0 : index
    %c2_33 = arith.constant 2 : index
    %53 = memref.load %arg3[%c0_32, %c2_33] : memref<3x8xf32, #tpu.memory_space<smem>>
    %c1_34 = arith.constant 1 : index
    %c2_35 = arith.constant 2 : index
    %54 = memref.load %arg3[%c1_34, %c2_35] : memref<3x8xf32, #tpu.memory_space<smem>>
    %c2_36 = arith.constant 2 : index
    %c2_37 = arith.constant 2 : index
    %55 = memref.load %arg3[%c2_36, %c2_37] : memref<3x8xf32, #tpu.memory_space<smem>>
    %56 = vector.broadcast %53 : f32 to vector<8x128xf32>
    %57 = arith.addf %4, %56 : vector<8x128xf32>
    %58 = vector.broadcast %54 : f32 to vector<8x128xf32>
    %59 = arith.addf %6, %58 : vector<8x128xf32>
    %60 = vector.broadcast %55 : f32 to vector<8x128xf32>
    %61 = arith.addf %8, %60 : vector<8x128xf32>
    %62 = arith.mulf %57, %57 : vector<8x128xf32>
    %63 = arith.mulf %59, %59 : vector<8x128xf32>
    %64 = arith.addf %62, %63 : vector<8x128xf32>
    %65 = math.absf %61 : vector<8x128xf32>
    %cst_38 = arith.constant 8.000000e+02 : f32
    %66 = vector.broadcast %cst_38 : f32 to vector<8x128xf32>
    %67 = arith.cmpf olt, %65, %66 : vector<8x128xf32>
    %cst_39 = arith.constant 0x7F800000 : f32
    %68 = vector.broadcast %cst_39 : f32 to vector<8x128xf32>
    %69 = arith.select %67, %64, %68 : vector<8x128xi1>, vector<8x128xf32>
    %cst_40 = arith.constant dense<0x7F800000> : vector<8xf32>
    %70 = vector.multi_reduction <minimumf>, %69, %cst_40 [1] : vector<8x128xf32> to vector<8xf32>
    %71 = vector.shape_cast %70 : vector<8xf32> to vector<8x1xf32>
    %c0_41 = arith.constant 0 : index
    %c2_42 = arith.constant 2 : index
    %72 = vector.load %arg5[%c0_41, %c2_42] : memref<8x8xf32, #tpu.memory_space<vmem>>, vector<8x1xf32>
    %73 = arith.minimumf %72, %71 : vector<8x1xf32>
    %c0_43 = arith.constant 0 : index
    %c2_44 = arith.constant 2 : index
    %74 = vector.load %arg5[%c0_43, %c2_44] : memref<8x8xf32, #tpu.memory_space<vmem>>, vector<8x1xf32>
    tpu.vector_store %arg5[%c0_43, %c2_44], %73 {strides = array<i32>} : memref<8x8xf32, #tpu.memory_space<vmem>>, vector<8x1xf32>,
    %c0_45 = arith.constant 0 : index
    %c3 = arith.constant 3 : index
    %75 = memref.load %arg3[%c0_45, %c3] : memref<3x8xf32, #tpu.memory_space<smem>>
    %c1_46 = arith.constant 1 : index
    %c3_47 = arith.constant 3 : index
    %76 = memref.load %arg3[%c1_46, %c3_47] : memref<3x8xf32, #tpu.memory_space<smem>>
    %c2_48 = arith.constant 2 : index
    %c3_49 = arith.constant 3 : index
    %77 = memref.load %arg3[%c2_48, %c3_49] : memref<3x8xf32, #tpu.memory_space<smem>>
    %78 = vector.broadcast %75 : f32 to vector<8x128xf32>
    %79 = arith.addf %4, %78 : vector<8x128xf32>
    %80 = vector.broadcast %76 : f32 to vector<8x128xf32>
    %81 = arith.addf %6, %80 : vector<8x128xf32>
    %82 = vector.broadcast %77 : f32 to vector<8x128xf32>
    %83 = arith.addf %8, %82 : vector<8x128xf32>
    %84 = arith.mulf %79, %79 : vector<8x128xf32>
    %85 = arith.mulf %81, %81 : vector<8x128xf32>
    %86 = arith.addf %84, %85 : vector<8x128xf32>
    %87 = math.absf %83 : vector<8x128xf32>
    %cst_50 = arith.constant 8.000000e+02 : f32
    %88 = vector.broadcast %cst_50 : f32 to vector<8x128xf32>
    %89 = arith.cmpf olt, %87, %88 : vector<8x128xf32>
    %cst_51 = arith.constant 0x7F800000 : f32
    %90 = vector.broadcast %cst_51 : f32 to vector<8x128xf32>
    %91 = arith.select %89, %86, %90 : vector<8x128xi1>, vector<8x128xf32>
    %cst_52 = arith.constant dense<0x7F800000> : vector<8xf32>
    %92 = vector.multi_reduction <minimumf>, %91, %cst_52 [1] : vector<8x128xf32> to vector<8xf32>
    %93 = vector.shape_cast %92 : vector<8xf32> to vector<8x1xf32>
    %c0_53 = arith.constant 0 : index
    %c3_54 = arith.constant 3 : index
    %94 = vector.load %arg5[%c0_53, %c3_54] : memref<8x8xf32, #tpu.memory_space<vmem>>, vector<8x1xf32>
    %95 = arith.minimumf %94, %93 : vector<8x1xf32>
    %c0_55 = arith.constant 0 : index
    %c3_56 = arith.constant 3 : index
    %96 = vector.load %arg5[%c0_55, %c3_56] : memref<8x8xf32, #tpu.memory_space<vmem>>, vector<8x1xf32>
    tpu.vector_store %arg5[%c0_55, %c3_56], %95 {strides = array<i32>} : memref<8x8xf32, #tpu.memory_space<vmem>>, vector<8x1xf32>,
    %c0_57 = arith.constant 0 : index
    %c4 = arith.constant 4 : index
    %97 = memref.load %arg3[%c0_57, %c4] : memref<3x8xf32, #tpu.memory_space<smem>>
    %c1_58 = arith.constant 1 : index
    %c4_59 = arith.constant 4 : index
    %98 = memref.load %arg3[%c1_58, %c4_59] : memref<3x8xf32, #tpu.memory_space<smem>>
    %c2_60 = arith.constant 2 : index
    %c4_61 = arith.constant 4 : index
    %99 = memref.load %arg3[%c2_60, %c4_61] : memref<3x8xf32, #tpu.memory_space<smem>>
    %100 = vector.broadcast %97 : f32 to vector<8x128xf32>
    %101 = arith.addf %4, %100 : vector<8x128xf32>
    %102 = vector.broadcast %98 : f32 to vector<8x128xf32>
    %103 = arith.addf %6, %102 : vector<8x128xf32>
    %104 = vector.broadcast %99 : f32 to vector<8x128xf32>
    %105 = arith.addf %8, %104 : vector<8x128xf32>
    %106 = arith.mulf %101, %101 : vector<8x128xf32>
    %107 = arith.mulf %103, %103 : vector<8x128xf32>
    %108 = arith.addf %106, %107 : vector<8x128xf32>
    %109 = math.absf %105 : vector<8x128xf32>
    %cst_62 = arith.constant 8.000000e+02 : f32
    %110 = vector.broadcast %cst_62 : f32 to vector<8x128xf32>
    %111 = arith.cmpf olt, %109, %110 : vector<8x128xf32>
    %cst_63 = arith.constant 0x7F800000 : f32
    %112 = vector.broadcast %cst_63 : f32 to vector<8x128xf32>
    %113 = arith.select %111, %108, %112 : vector<8x128xi1>, vector<8x128xf32>
    %cst_64 = arith.constant dense<0x7F800000> : vector<8xf32>
    %114 = vector.multi_reduction <minimumf>, %113, %cst_64 [1] : vector<8x128xf32> to vector<8xf32>
    %115 = vector.shape_cast %114 : vector<8xf32> to vector<8x1xf32>
    %c0_65 = arith.constant 0 : index
    %c4_66 = arith.constant 4 : index
    %116 = vector.load %arg5[%c0_65, %c4_66] : memref<8x8xf32, #tpu.memory_space<vmem>>, vector<8x1xf32>
    %117 = arith.minimumf %116, %115 : vector<8x1xf32>
    %c0_67 = arith.constant 0 : index
    %c4_68 = arith.constant 4 : index
    %118 = vector.load %arg5[%c0_67, %c4_68] : memref<8x8xf32, #tpu.memory_space<vmem>>, vector<8x1xf32>
    tpu.vector_store %arg5[%c0_67, %c4_68], %117 {strides = array<i32>} : memref<8x8xf32, #tpu.memory_space<vmem>>, vector<8x1xf32>,
    %c0_69 = arith.constant 0 : index
    %c5 = arith.constant 5 : index
    %119 = memref.load %arg3[%c0_69, %c5] : memref<3x8xf32, #tpu.memory_space<smem>>
    %c1_70 = arith.constant 1 : index
    %c5_71 = arith.constant 5 : index
    %120 = memref.load %arg3[%c1_70, %c5_71] : memref<3x8xf32, #tpu.memory_space<smem>>
    %c2_72 = arith.constant 2 : index
    %c5_73 = arith.constant 5 : index
    %121 = memref.load %arg3[%c2_72, %c5_73] : memref<3x8xf32, #tpu.memory_space<smem>>
    %122 = vector.broadcast %119 : f32 to vector<8x128xf32>
    %123 = arith.addf %4, %122 : vector<8x128xf32>
    %124 = vector.broadcast %120 : f32 to vector<8x128xf32>
    %125 = arith.addf %6, %124 : vector<8x128xf32>
    %126 = vector.broadcast %121 : f32 to vector<8x128xf32>
    %127 = arith.addf %8, %126 : vector<8x128xf32>
    %128 = arith.mulf %123, %123 : vector<8x128xf32>
    %129 = arith.mulf %125, %125 : vector<8x128xf32>
    %130 = arith.addf %128, %129 : vector<8x128xf32>
    %131 = math.absf %127 : vector<8x128xf32>
    %cst_74 = arith.constant 8.000000e+02 : f32
    %132 = vector.broadcast %cst_74 : f32 to vector<8x128xf32>
    %133 = arith.cmpf olt, %131, %132 : vector<8x128xf32>
    %cst_75 = arith.constant 0x7F800000 : f32
    %134 = vector.broadcast %cst_75 : f32 to vector<8x128xf32>
    %135 = arith.select %133, %130, %134 : vector<8x128xi1>, vector<8x128xf32>
    %cst_76 = arith.constant dense<0x7F800000> : vector<8xf32>
    %136 = vector.multi_reduction <minimumf>, %135, %cst_76 [1] : vector<8x128xf32> to vector<8xf32>
    %137 = vector.shape_cast %136 : vector<8xf32> to vector<8x1xf32>
    %c0_77 = arith.constant 0 : index
    %c5_78 = arith.constant 5 : index
    %138 = vector.load %arg5[%c0_77, %c5_78] : memref<8x8xf32, #tpu.memory_space<vmem>>, vector<8x1xf32>
    %139 = arith.minimumf %138, %137 : vector<8x1xf32>
    %c0_79 = arith.constant 0 : index
    %c5_80 = arith.constant 5 : index
    %140 = vector.load %arg5[%c0_79, %c5_80] : memref<8x8xf32, #tpu.memory_space<vmem>>, vector<8x1xf32>
    tpu.vector_store %arg5[%c0_79, %c5_80], %139 {strides = array<i32>} : memref<8x8xf32, #tpu.memory_space<vmem>>, vector<8x1xf32>,
    %c0_81 = arith.constant 0 : index
    %c6 = arith.constant 6 : index
    %141 = memref.load %arg3[%c0_81, %c6] : memref<3x8xf32, #tpu.memory_space<smem>>
    %c1_82 = arith.constant 1 : index
    %c6_83 = arith.constant 6 : index
    %142 = memref.load %arg3[%c1_82, %c6_83] : memref<3x8xf32, #tpu.memory_space<smem>>
    %c2_84 = arith.constant 2 : index
    %c6_85 = arith.constant 6 : index
    %143 = memref.load %arg3[%c2_84, %c6_85] : memref<3x8xf32, #tpu.memory_space<smem>>
    %144 = vector.broadcast %141 : f32 to vector<8x128xf32>
    %145 = arith.addf %4, %144 : vector<8x128xf32>
    %146 = vector.broadcast %142 : f32 to vector<8x128xf32>
    %147 = arith.addf %6, %146 : vector<8x128xf32>
    %148 = vector.broadcast %143 : f32 to vector<8x128xf32>
    %149 = arith.addf %8, %148 : vector<8x128xf32>
    %150 = arith.mulf %145, %145 : vector<8x128xf32>
    %151 = arith.mulf %147, %147 : vector<8x128xf32>
    %152 = arith.addf %150, %151 : vector<8x128xf32>
    %153 = math.absf %149 : vector<8x128xf32>
    %cst_86 = arith.constant 8.000000e+02 : f32
    %154 = vector.broadcast %cst_86 : f32 to vector<8x128xf32>
    %155 = arith.cmpf olt, %153, %154 : vector<8x128xf32>
    %cst_87 = arith.constant 0x7F800000 : f32
    %156 = vector.broadcast %cst_87 : f32 to vector<8x128xf32>
    %157 = arith.select %155, %152, %156 : vector<8x128xi1>, vector<8x128xf32>
    %cst_88 = arith.constant dense<0x7F800000> : vector<8xf32>
    %158 = vector.multi_reduction <minimumf>, %157, %cst_88 [1] : vector<8x128xf32> to vector<8xf32>
    %159 = vector.shape_cast %158 : vector<8xf32> to vector<8x1xf32>
    %c0_89 = arith.constant 0 : index
    %c6_90 = arith.constant 6 : index
    %160 = vector.load %arg5[%c0_89, %c6_90] : memref<8x8xf32, #tpu.memory_space<vmem>>, vector<8x1xf32>
    %161 = arith.minimumf %160, %159 : vector<8x1xf32>
    %c0_91 = arith.constant 0 : index
    %c6_92 = arith.constant 6 : index
    %162 = vector.load %arg5[%c0_91, %c6_92] : memref<8x8xf32, #tpu.memory_space<vmem>>, vector<8x1xf32>
    tpu.vector_store %arg5[%c0_91, %c6_92], %161 {strides = array<i32>} : memref<8x8xf32, #tpu.memory_space<vmem>>, vector<8x1xf32>,
    %c0_93 = arith.constant 0 : index
    %c7 = arith.constant 7 : index
    %163 = memref.load %arg3[%c0_93, %c7] : memref<3x8xf32, #tpu.memory_space<smem>>
    %c1_94 = arith.constant 1 : index
    %c7_95 = arith.constant 7 : index
    %164 = memref.load %arg3[%c1_94, %c7_95] : memref<3x8xf32, #tpu.memory_space<smem>>
    %c2_96 = arith.constant 2 : index
    %c7_97 = arith.constant 7 : index
    %165 = memref.load %arg3[%c2_96, %c7_97] : memref<3x8xf32, #tpu.memory_space<smem>>
    %166 = vector.broadcast %163 : f32 to vector<8x128xf32>
    %167 = arith.addf %4, %166 : vector<8x128xf32>
    %168 = vector.broadcast %164 : f32 to vector<8x128xf32>
    %169 = arith.addf %6, %168 : vector<8x128xf32>
    %170 = vector.broadcast %165 : f32 to vector<8x128xf32>
    %171 = arith.addf %8, %170 : vector<8x128xf32>
    %172 = arith.mulf %167, %167 : vector<8x128xf32>
    %173 = arith.mulf %169, %169 : vector<8x128xf32>
    %174 = arith.addf %172, %173 : vector<8x128xf32>
    %175 = math.absf %171 : vector<8x128xf32>
    %cst_98 = arith.constant 8.000000e+02 : f32
    %176 = vector.broadcast %cst_98 : f32 to vector<8x128xf32>
    %177 = arith.cmpf olt, %175, %176 : vector<8x128xf32>
    %cst_99 = arith.constant 0x7F800000 : f32
    %178 = vector.broadcast %cst_99 : f32 to vector<8x128xf32>
    %179 = arith.select %177, %174, %178 : vector<8x128xi1>, vector<8x128xf32>
    %cst_100 = arith.constant dense<0x7F800000> : vector<8xf32>
    %180 = vector.multi_reduction <minimumf>, %179, %cst_100 [1] : vector<8x128xf32> to vector<8xf32>
    %181 = vector.shape_cast %180 : vector<8xf32> to vector<8x1xf32>
    %c0_101 = arith.constant 0 : index
    %c7_102 = arith.constant 7 : index
    %182 = vector.load %arg5[%c0_101, %c7_102] : memref<8x8xf32, #tpu.memory_space<vmem>>, vector<8x1xf32>
    %183 = arith.minimumf %182, %181 : vector<8x1xf32>
    %c0_103 = arith.constant 0 : index
    %c7_104 = arith.constant 7 : index
    %184 = vector.load %arg5[%c0_103, %c7_104] : memref<8x8xf32, #tpu.memory_space<vmem>>, vector<8x1xf32>
    tpu.vector_store %arg5[%c0_103, %c7_104], %183 {strides = array<i32>} : memref<8x8xf32, #tpu.memory_space<vmem>>, vector<8x1xf32>,
    %c0_i32_105 = arith.constant 0 : i32
    %185 = arith.cmpi eq, %arg1, %c0_i32_105 : i32
    %186 = arith.extui %185 : i1 to i32
    %c0_i32_106 = arith.constant 0 : i32
    %187 = arith.cmpi ne, %186, %c0_i32_106 : i32
    scf.if %187 {
      %c0_107 = arith.constant 0 : index
      %c0_108 = arith.constant 0 : index
      %188 = vector.load %arg5[%c0_107, %c0_108] : memref<8x8xf32, #tpu.memory_space<vmem>>, vector<8x8xf32>
      %189 = math.sqrt %188 : vector<8x8xf32>
      %cst_109 = arith.constant 5.39956789E-4 : f32
      %190 = vector.broadcast %cst_109 : f32 to vector<8x8xf32>
      %191 = arith.mulf %189, %190 : vector<8x8xf32>
      %c0_110 = arith.constant 0 : index
      %c0_111 = arith.constant 0 : index
      %192 = vector.load %arg4[%c0_110, %c0_111] : memref<8x8xf32, #tpu.memory_space<vmem>>, vector<8x8xf32>
      tpu.vector_store %arg4[%c0_110, %c0_111], %191 {strides = array<i32>} : memref<8x8xf32, #tpu.memory_space<vmem>>, vector<8x8xf32>,
    } else {
    }
    return
  }
  func.func @transform_0(%arg0: i32, %arg1: i32) -> (i32, i32, i32) {
    %c0_i32 = arith.constant 0 : i32
    %c0_i32_0 = arith.constant 0 : i32
    return %c0_i32, %arg0, %arg1 : i32, i32, i32
  }
  func.func @transform_1(%arg0: i32, %arg1: i32) -> (i32, i32) {
    %c0_i32 = arith.constant 0 : i32
    %c0_i32_0 = arith.constant 0 : i32
    %c0_i32_1 = arith.constant 0 : i32
    return %c0_i32, %c0_i32_0 : i32, i32
  }
  func.func @transform_2(%arg0: i32, %arg1: i32) -> (i32, i32) {
    %c0_i32 = arith.constant 0 : i32
    %c0_i32_0 = arith.constant 0 : i32
    return %arg0, %c0_i32 : i32, i32
  }
}

</mosaic_0001>

<bundles_post_ra>
// kernel: tpu_custom_call.1
= control target key start
LH: loop header
LB: loop body
LE: loop exit
PB: predicated region body
PF: predicated region fallthrough
CT: control target
= control target key end

     0   :  { %7 = vsyncpa [#allocation4], 0  ;;  %s464_s0 = inlined_call_operand.hbm [shape: f32[3,8,128], index: 0, kind: input, shape index: {}]   ;;  %s465_s1 = inlined_call_operand.hbm [shape: f32[3,8], index: 1, kind: input, shape index: {}]   ;;  %s466_s2 = inlined_call_operand.hbm [shape: f32[8,8], index: 2, kind: output, shape index: {}]  }
   0x1   :  { %8 = vsyncpa [#allocation6], 0 }
   0x2   :  { %9 = vsyncpa [#allocation5], 0  ;;  %s14_s11 = sshll.u32 %s464_s0, 4  ;;  %s354_s12 = smov [#allocation3]   ;;  %s15_s11 = int_to_ptr.hbm [resolvable:$true] %s14_s11 }
   0x3   :  { %s16_s13 = sshll.u32 %s354_s12, 4  ;;  %s28_s16 = sshll.u32 %s465_s1, 4  ;;  %s17_s13 = int_to_ptr.vmem [resolvable:$true] %s16_s13  ;;  %s29_s16 = int_to_ptr.hbm [resolvable:$true] %s28_s16 }
   0x4   :  { %s355_s17 = smov 128   ;;  %s356_s18 = smov 8  }
   0x5   :  { %22 = dma.hbm_to_vmem [thread:$0]  %s15_s11, 384, %s17_s13, [#allocation4], %s355_s17, %s355_s17, %s356_s18  }
   0x6   :  { %s357_s19 = smov [#allocation7]  }
   0x7   :  { %31 = dma.hbm_to_smem %s29_s16, 64, %s357_s19, [#allocation6]  }
   0x8   :  { %348 = dma.done.wait [#allocation4], 384  }
   0x9   :  { %349 = vsyncadd [#allocation4], 4294966912 }
   0xa   :  { %350 = dma.done.wait [#allocation6], 64  }
   0xb   :  { %351 = vsyncadd [#allocation6], 4294967232 }
   0xc   :  { %40 = sfence }
   0xd   :  { %s52_s0 = sld [smem:[#allocation7]]  ;;  %v381_v0 = vld [vmem:[#allocation3] sm:$0xff]  ;;  %v383_v1 = vld [vmem:[#allocation3 + $0x8] sm:$0xff]  ;;  %v385_v2 = vld [vmem:[#allocation3 + $0x10] sm:$0xff]  ;;  %vm45_vm8 = vcmask 64512   ;;  %vm71_vm9 = vcmask 7168  }
   0xe   :  { %s257_s20 = sld [smem:[#allocation7 + $0x80]]  ;;  %vm92_vm10 = vcmask 15368   ;;  %vm113_vm11 = vcmask 23568   ;;  %vm134_vm12 = vcmask 31768   ;;  %vm155_vm13 = vcmask 39968   ;;  %s359_s14 = smov [#allocation8]  }
   0xf   :  { %s258_s21 = sld [smem:[#allocation7 + $0x100]]  ;;  %vm176_vm14 = vcmask 48168   ;;  %vm197_vm15 = vcmask 56368   ;;  %s244_s15 = sshll.u32 %s359_s14, 4  ;;  %s245_s15 = int_to_ptr.vmem [resolvable:$true] %s244_s15 }
  0x10   :  { %s259_s22 = sld [smem:[#allocation7 + $0x1]]  ;;  %s246_s18 = sshll.u32 %s466_s2, 4  ;;  %s247_s18 = int_to_ptr.hbm [resolvable:$true] %s246_s18 }
  0x11   :  { %s260_s23 = sld [smem:[#allocation7 + $0x81]] }
  0x12   :  { %s261_s1 = sld [smem:[#allocation7 + $0x101]] }
  0x13   :  { %v55_v3 = vstv %s52_s0  ;;  %s262_s24 = sld [smem:[#allocation7 + $0x2]] }
  0x14   :  { %v56_v4 = vadd.f32 %v55_v3, %v381_v0  ;;  %v57_v5 = vstv %s257_s20  ;;  %s263_s25 = sld [smem:[#allocation7 + $0x82]] }
  0x15   :  { %v58_v6 = vadd.f32 %v57_v5, %v383_v1  ;;  %v59_v7 = vstv %s258_s21  ;;  %s264_s26 = sld [smem:[#allocation7 + $0x102]] }
  0x16   :  { %v60_v8 = vadd.f32 %v59_v7, %v385_v2  ;;  %v61_v9 = vmul.f32 %v56_v4, %v56_v4  ;;  %v76_v10 = vstv %s259_s22  ;;  %s390_s27 = sld [smem:[#allocation7 + $0x3]] }
  0x17   :  { %v62_v11 = vmul.f32 %v58_v6, %v58_v6  ;;  %v77_v12 = vadd.f32 %v76_v10, %v381_v0  ;;  %v78_v13 = vstv %s260_s23  ;;  %s393_s28 = sld [smem:[#allocation7 + $0x83]] }
  0x18   :  { %v64_v14 = vand.u32 2147483647, %v60_v8  ;;  %v79_v15 = vadd.f32 %v78_v13, %v383_v1  ;;  %v80_v16 = vstv %s261_s1  ;;  %s396_s29 = sld [smem:[#allocation7 + $0x103]] }
  0x19   :  { %v63_v17 = vadd.f32 %v62_v11, %v61_v9  ;;  %v81_v18 = vadd.f32 %v80_v16, %v385_v2  ;;  %v82_v19 = vmul.f32 %v77_v12, %v77_v12  ;;  %v97_v20 = vstv %s262_s24  ;;  %s399_s30 = sld [smem:[#allocation7 + $0x4]] }
  0x1a   :  { %vm65_vm0 = vcmp.lt.f32.partialorder %v64_v14, 800.0  ;;  %v83_v21 = vmul.f32 %v79_v15, %v79_v15  ;;  %v98_v22 = vadd.f32 %v97_v20, %v381_v0  ;;  %v99_v23 = vstv %s263_s25  ;;  %s402_s3 = sld [smem:[#allocation7 + $0x84]] }
  0x1b   :  { %v66_v24 = vsel %vm65_vm0, %v63_v17, inf  ;;  %v85_v25 = vand.u32 2147483647, %v81_v18  ;;  %v100_v26 = vadd.f32 %v99_v23, %v383_v1  ;;  %v101_v27 = vstv %s264_s26  ;;  %s405_s4 = sld [smem:[#allocation7 + $0x104]] }
  0x1c   :  { %67 = vmin.xlane.f32.xlu0 %v66_v24  ;;  %v84_v28 = vadd.f32 %v83_v21, %v82_v19  ;;  %v102_v29 = vadd.f32 %v101_v27, %v385_v2  ;;  %v103_v30 = vmul.f32 %v98_v22, %v98_v22  ;;  %v118_v31 = vstv %s390_s27  ;;  %s409_s5 = sld [smem:[#allocation7 + $0x5]] }
  0x1d   :  { %vm411_vm1 = vcmp.lt.f32.partialorder %v85_v25, 800.0  ;;  %v104_v33 = vmul.f32 %v100_v26, %v100_v26  ;;  %v119_v34 = vadd.f32 %v118_v31, %v381_v0  ;;  %v120_v35 = vstv %s393_s28  ;;  %s417_s6 = sld [smem:[#allocation7 + $0x85]] }
  0x1e   :  { %v87_v36 = vsel %vm411_vm1, %v84_v28, inf  ;;  %v106_v37 = vand.u32 2147483647, %v102_v29  ;;  %v121_v38 = vadd.f32 %v120_v35, %v383_v1  ;;  %v122_v39 = vstv %s396_s29  ;;  %s423_s7 = sld [smem:[#allocation7 + $0x105]] }
  0x1f   :  { %v105_v40 = vadd.f32 %v104_v33, %v103_v30  ;;  %v123_v41 = vadd.f32 %v122_v39, %v385_v2  ;;  %v124_v42 = vmul.f32 %v119_v34, %v119_v34  ;;  %v139_v43 = vstv %s399_s30  ;;  %s427_s8 = sld [smem:[#allocation7 + $0x6]] }
  0x20   :  { %vm107_vm2 = vcmp.lt.f32.partialorder %v106_v37, 800.0  ;;  %v125_v44 = vmul.f32 %v121_v38, %v121_v38  ;;  %v140_v45 = vadd.f32 %v139_v43, %v381_v0  ;;  %v141_v46 = vstv %s402_s3  ;;  %s431_s9 = sld [smem:[#allocation7 + $0x86]] }
  0x21   :  { %v108_v47 = vsel %vm107_vm2, %v105_v40, inf  ;;  %v127_v48 = vand.u32 2147483647, %v123_v41  ;;  %v142_v49 = vadd.f32 %v141_v46, %v383_v1  ;;  %v143_v50 = vstv %s405_s4  ;;  %s435_s10 = sld [smem:[#allocation7 + $0x106]] }
  0x22   :  { %109 = vmin.xlane.f32.xlu1 %v108_v47  ;;  %v126_v51 = vadd.f32 %v125_v44, %v124_v42  ;;  %v144_v52 = vadd.f32 %v143_v50, %v385_v2  ;;  %v145_v53 = vmul.f32 %v140_v45, %v140_v45  ;;  %v160_v54 = vstv %s409_s5  ;;  %s277_s11 = sld [smem:[#allocation7 + $0x7]] }
  0x23   :  { %vm439_vm3 = vcmp.lt.f32.partialorder %v127_v48, 800.0  ;;  %v146_v56 = vmul.f32 %v142_v49, %v142_v49  ;;  %v161_v57 = vadd.f32 %v160_v54, %v381_v0  ;;  %v162_v58 = vstv %s417_s6  ;;  %s278_s12 = sld [smem:[#allocation7 + $0x87]] }
  0x24   :  { %88 = vmin.xlane.f32.xlu0 %v87_v36  ;;  %v129_v59 = vsel %vm439_vm3, %v126_v51, inf  ;;  %v148_v60 = vand.u32 2147483647, %v144_v52  ;;  %v163_v61 = vadd.f32 %v162_v58, %v383_v1  ;;  %v164_v62 = vstv %s423_s7  ;;  %s279_s13 = sld [smem:[#allocation7 + $0x107]] }
  0x25   :  { %v147_v63 = vadd.f32 %v146_v56, %v145_v53  ;;  %v165_v3 = vadd.f32 %v164_v62, %v385_v2  ;;  %v166_v4 = vmul.f32 %v161_v57, %v161_v57  ;;  %v181_v5 = vstv %s427_s8 }
  0x26   :  { %vm149_vm4 = vcmp.lt.f32.partialorder %v148_v60, 800.0  ;;  %v167_v6 = vmul.f32 %v163_v61, %v163_v61  ;;  %v182_v7 = vadd.f32 %v181_v5, %v381_v0  ;;  %v183_v8 = vstv %s431_s9 }
  0x27   :  { %v150_v9 = vsel %vm149_vm4, %v147_v63, inf  ;;  %v169_v10 = vand.u32 2147483647, %v165_v3  ;;  %v184_v11 = vadd.f32 %v183_v8, %v383_v1  ;;  %v185_v12 = vstv %s435_s10 }
  0x28   :  { %151 = vmin.xlane.f32.xlu2 %v150_v9  ;;  %v186_v13 = vadd.f32 %v185_v12, %v385_v2  ;;  %v187_v14 = vmul.f32 %v182_v7, %v182_v7  ;;  %v202_v15 = vstv %s277_s11  ;;  %v168_v16 = vadd.f32 %v167_v6, %v166_v4 }
  0x29   :  { %v188_v17 = vmul.f32 %v184_v11, %v184_v11  ;;  %v203_v18 = vadd.f32 %v202_v15, %v381_v0  ;;  %v204_v19 = vstv %s278_s12  ;;  %vm170_vm5 = vcmp.lt.f32.partialorder %v169_v10, 800.0 }
  0x2a   :  { %130 = vmin.xlane.f32.xlu1 %v129_v59  ;;  %v190_v20 = vand.u32 2147483647, %v186_v13  ;;  %v205_v21 = vadd.f32 %v204_v19, %v383_v1  ;;  %v206_v22 = vstv %s279_s13  ;;  %v171_v27 = vsel %vm170_vm5, %v168_v16, inf }
  0x2b   :  { %v189_v23 = vadd.f32 %v188_v17, %v187_v14  ;;  %v207_v24 = vadd.f32 %v206_v22, %v385_v2  ;;  %v208_v25 = vmul.f32 %v203_v18, %v203_v18  ;;  %v358_v31 = vmov inf  }
  0x2c   :  { %vm191_vm6 = vcmp.lt.f32.partialorder %v190_v20, 800.0  ;;  %v209_v26 = vmul.f32 %v205_v21, %v205_v21  ;;  %46 = vst.msk [vmem:[#allocation2] sm:$0xff] %vm45_vm8, %v358_v31  ;;  %vm218_vm0 = vcmask 64568  }
  0x2d   :  { %v192_v28 = vsel %vm191_vm6, %v189_v23, inf  ;;  %v211_v29 = vand.u32 2147483647, %v207_v24 }
  0x2e   :  { %193 = vmin.xlane.f32.xlu0 %v192_v28  ;;  %v210_v30 = vadd.f32 %v209_v26, %v208_v25 }
  0x2f   :  { %vm212_vm7 = vcmp.lt.f32.partialorder %v211_v29, 800.0 }
  0x30   :  { %172 = vmin.xlane.f32.xlu2 %v171_v27  ;;  %v213_v0 = vsel %vm212_vm7, %v210_v30, inf }
  0x32   :  { %214 = vmin.xlane.f32.xlu1 %v213_v0 }
  0x33   :  { %v69_v1 = vld [vmem:[#allocation2] sm:$0xff] }
  0x8f   :  { %v68_v32 = vpop.xlane.xlu0 %67 }
  0x90   :  { %v70_v2 = vmin.f32 %v69_v1, %v68_v32 }
  0x92   :  { %72 = vst.msk [vmem:[#allocation2] sm:$0xff] %vm71_vm9, %v70_v2 }
  0x95   :  { %v110_v36 = vpop.xlane.xlu1 %109 }
  0x97   :  { %v89_v33 = vpop.xlane.xlu0 %88 }
  0x99   :  { %v90_v34 = vld [vmem:[#allocation2] sm:$0xff] }
  0x9a   :  { %v91_v35 = vmin.f32 %v90_v34, %v89_v33 }
  0x9b   :  { %v152_v42 = vpop.xlane.xlu2 %151 }
  0x9c   :  { %93 = vst.msk [vmem:[#allocation2] sm:$0xff] %vm92_vm10, %v91_v35 }
  0x9d   :  { %v131_v39 = vpop.xlane.xlu1 %130 }
  0xa1   :  { %v194_v48 = vpop.xlane.xlu0 %193 }
  0xa3   :  { %v111_v37 = vld [vmem:[#allocation2] sm:$0xff]  ;;  %v173_v45 = vpop.xlane.xlu2 %172 }
  0xa4   :  { %v112_v38 = vmin.f32 %v111_v37, %v110_v36 }
  0xa5   :  { %v215_v51 = vpop.xlane.xlu1 %214 }
  0xa6   :  { %114 = vst.msk [vmem:[#allocation2] sm:$0xff] %vm113_vm11, %v112_v38 }
  0xad   :  { %v132_v40 = vld [vmem:[#allocation2] sm:$0xff] }
  0xae   :  { %v133_v41 = vmin.f32 %v132_v40, %v131_v39 }
  0xb0   :  { %135 = vst.msk [vmem:[#allocation2] sm:$0xff] %vm134_vm12, %v133_v41 }
  0xb7   :  { %v153_v43 = vld [vmem:[#allocation2] sm:$0xff] }
  0xb8   :  { %v154_v44 = vmin.f32 %v153_v43, %v152_v42 }
  0xba   :  { %156 = vst.msk [vmem:[#allocation2] sm:$0xff] %vm155_vm13, %v154_v44 }
  0xc1   :  { %v174_v46 = vld [vmem:[#allocation2] sm:$0xff] }
  0xc2   :  { %v175_v47 = vmin.f32 %v174_v46, %v173_v45 }
  0xc4   :  { %177 = vst.msk [vmem:[#allocation2] sm:$0xff] %vm176_vm14, %v175_v47 }
  0xcb   :  { %v195_v49 = vld [vmem:[#allocation2] sm:$0xff] }
  0xcc   :  { %v196_v50 = vmin.f32 %v195_v49, %v194_v48 }
  0xce   :  { %198 = vst.msk [vmem:[#allocation2] sm:$0xff] %vm197_vm15, %v196_v50 }
  0xd5   :  { %v216_v52 = vld [vmem:[#allocation2] sm:$0xff] }
  0xd6   :  { %v217_v53 = vmin.f32 %v216_v52, %v215_v51 }
  0xd8   :  { %219 = vst.msk [vmem:[#allocation2] sm:$0xff] %vm218_vm0, %v217_v53 }
  0xdf   :  { %v223_v54 = vld [vmem:[#allocation2] sm:$0xff] }
  0xe0   :  { %286 = vrsqrt.f32 %v223_v54  ;;  %vm231_vm1 = vcmp.eq.f32.partialorder %v223_v54, inf  ;;  %v234_v62 = vand.u32 2147483648, %v223_v54  ;;  %vm233_vm2 = vcmp.eq.f32.partialorder %v223_v54, 0.0 }
  0xe6   :  { %v287_v55 = vpop.eup %286 }
  0xe7   :  { %v225_v56 = vmul.f32 %v287_v55, %v223_v54 }
  0xe9   :  { %v226_v57 = vmul.f32 %v287_v55, %v225_v56 }
  0xeb   :  { %v227_v58 = vmul.f32 0.5, %v226_v57 }
  0xed   :  { %v228_v59 = vsub.f32 1.5, %v227_v58 }
  0xef   :  { %v229_v60 = vmul.f32 %v287_v55, %v228_v59 }
  0xf1   :  { %v230_v61 = vmul.f32 %v229_v60, %v223_v54 }
  0xf3   :  { %v232_v63 = vsel %vm231_vm1, %v223_v54, %v230_v61 }
  0xf4   :  { %v235_v3 = vsel %vm233_vm2, %v234_v62, %v232_v63 }
  0xf5   :  { %v236_v4 = vmul.f32 0.0005399568, %v235_v3 }
  0xf7   :  { %238 = vst.msk [vmem:[#allocation8] sm:$0xff] %vm45_vm8, %v236_v4 }
  0xf8   :  { %249 = dma.vmem_to_hbm [thread:$0]  %s245_s15, 128, %s247_s18, [#allocation5]  }
  0xf9   :  { %352 = dma.done.wait [#allocation5], 128  }
  0xfa   :  { %353 = vsyncadd [#allocation5], 4294967168 }
  0xfb   :  { %254 = vsyncpa [#allocation4], 1 }
  0xfc   :  { %255 = vsyncpa [#allocation5], 1 }
  0xfd   :  { %256 = vsyncpa [#allocation6], 1 }

</bundles_post_ra>
